<compile_context>
chip_gen: v6e
topology: v6e:2x2x1
jax: 0.10.0
libtpu: 0.0.40
codegen_flags: <defaults>
</compile_context>

<pallas_src>
import functools
import math

import jax
import jax.numpy as jnp
from jax.experimental import pallas as pl
from jax.experimental.pallas import tpu as pltpu

H1 = 128        # first hidden width  (nn.Linear(state_dim, 128))
H2 = 64         # second hidden width (nn.Linear(128, 64))
H2_PAD = 128    # zero-padded hidden-2 width (lane-dense MXU contraction)
OUT_PAD = 8     # zero-padded output width (narrow HBM writeback; >= action_dim)


def _round_up(n, m):
    return ((n + m - 1) // m) * m


def _default_compute_dtype():
    """bf16 elementwise on v6e/v7x (bf16 VPU/EUP); f32 elsewhere (v5e-safe)."""
    try:
        kind = jax.devices()[0].device_kind.lower()
    except Exception:
        return jnp.float32
    if "v6" in kind or "v7" in kind:
        return jnp.bfloat16
    return jnp.float32


def dqn_kernel(x_ref, w1_ref, b1_ref, w2_ref, b2_ref, w3_ref, b3_ref, o_ref,
               *, compute_dtype):
    # ---- Layer 1: K == state_dim (2) -> VPU broadcast FMAs, not the MXU ----
    x = x_ref[...].astype(compute_dtype)             # (Bt, S)
    w1 = w1_ref[...].astype(compute_dtype)           # (S, 128)
    h1 = b1_ref[...].astype(compute_dtype)           # (1, 128), broadcasts on add
    for k in range(x_ref.shape[1]):                  # static unroll (S == 2)
        h1 = h1 + x[:, k:k + 1] * w1[k:k + 1, :]
    h1 = jnp.maximum(h1, 0).astype(w2_ref.dtype)     # (Bt, 128), ready for MXU

    # ---- Layer 2: lane-dense 128x128 MXU matmul, f32 accumulate ----
    h2 = jnp.dot(h1, w2_ref[...], preferred_element_type=jnp.float32)
    h2 = jnp.maximum(h2.astype(compute_dtype) + b2_ref[...].astype(compute_dtype), 0)
    h2 = h2.astype(w3_ref.dtype)                     # (Bt, 128)

    # ---- Layer 3: (Bt,128) x (128, OUT_PAD) MXU matmul; cols >= action_dim are 0 ----
    out = jnp.dot(h2, w3_ref[...], preferred_element_type=jnp.float32)
    out = out + b3_ref[...].astype(jnp.float32)
    o_ref[...] = out.astype(o_ref.dtype)             # (Bt, 8): 16x less writeback


def dqn_forward(x, params, action_dim, *, block_rows=8192, compute_dtype=None):
    """Batched DQN forward. x: (B, state_dim) f32. Returns (B, action_dim) f32 Q-values."""
    w1, b1, w2, b2, w3, b3 = params
    B, S = x.shape
    assert w1.shape == (S, H1) and w3.shape == (H2_PAD, OUT_PAD)
    assert action_dim <= OUT_PAD
    if compute_dtype is None:
        compute_dtype = _default_compute_dtype()

    # Row tile: as large as possible (amortizes per-step pipeline overhead) but
    # with >= 2 grid steps when there is enough work, so the ("parallel",) axis
    # can span v7x's 2 TensorCores; never shrunk below ~2048 rows for that.
    bt = min(block_rows, _round_up(B, 8))
    if B > 2 * 2048:
        bt = min(bt, max(2048, _round_up((B + 1) // 2, 8)))
    bt = _round_up(bt, 8)
    Bp = _round_up(B, bt)
    if Bp != B:
        x = jnp.pad(x, ((0, Bp - B), (0, 0)))

    grid = (Bp // bt,)

    bytes_per = lambda a: a.size * a.dtype.itemsize
    flops = 2 * Bp * (S * H1 + H1 * H2_PAD + H2_PAD * OUT_PAD)
    bytes_accessed = (bytes_per(x) + sum(bytes_per(p) for p in params)
                      + Bp * OUT_PAD * 4)

    out = pl.pallas_call(
        functools.partial(dqn_kernel, compute_dtype=compute_dtype),
        out_shape=jax.ShapeDtypeStruct((Bp, OUT_PAD), jnp.float32),
        grid_spec=pltpu.PrefetchScalarGridSpec(
            num_scalar_prefetch=0,
            grid=grid,
            in_specs=[
                pl.BlockSpec((bt, S), lambda i: (i, 0)),      # x: row-tiled
                pl.BlockSpec(w1.shape, lambda i: (0, 0)),     # weights/biases:
                pl.BlockSpec(b1.shape, lambda i: (0, 0)),     # constant block ->
                pl.BlockSpec(w2.shape, lambda i: (0, 0)),     # VMEM-resident,
                pl.BlockSpec(b2.shape, lambda i: (0, 0)),     # no per-step DMA
                pl.BlockSpec(w3.shape, lambda i: (0, 0)),
                pl.BlockSpec(b3.shape, lambda i: (0, 0)),
            ],
            out_specs=pl.BlockSpec((bt, OUT_PAD), lambda i: (i, 0)),
        ),
        compiler_params=pltpu.CompilerParams(
            dimension_semantics=("parallel",),      # shard batch over v7x's 2 TCs
            vmem_limit_bytes=32 * 1024 * 1024,      # safe on v5e/v6e/v7x (64 MiB/TC)
        ),
        cost_estimate=pl.CostEstimate(
            flops=int(flops), transcendentals=0, bytes_accessed=int(bytes_accessed)),
    )(x, w1, b1, w2, b2, w3, b3)

    return out[:B, :action_dim]


def init_params(key, state_dim, action_dim, dtype=jnp.bfloat16):
    """PyTorch nn.Linear default init (U(-1/sqrt(fan_in), 1/sqrt(fan_in))),
    weights stored transposed as (in, out). Hidden-2 is zero-padded to 128 so
    the contraction side of both MXU matmuls is lane-dense; the output is
    zero-padded only to OUT_PAD=8 so the HBM writeback stream stays narrow.
    bf16 storage (default) halves weight DMA and hits the native bf16 MXU rate;
    accumulation stays f32, so Q-value accuracy is unaffected."""
    dims = [(state_dim, H1), (H1, H2), (H2, action_dim)]
    raw = []
    for fan_in, fan_out in dims:
        key, kw, kb = jax.random.split(key, 3)
        bound = 1.0 / math.sqrt(fan_in)
        w = jax.random.uniform(kw, (fan_in, fan_out), jnp.float32, -bound, bound)
        b = jax.random.uniform(kb, (1, fan_out), jnp.float32, -bound, bound)
        raw += [w, b]
    w1, b1, w2, b2, w3, b3 = raw
    # Zero-padding is numerically identical: padded ReLU outputs are 0, padded
    # output columns are 0 and sliced off in the wrapper.
    w2 = jnp.pad(w2, ((0, 0), (0, H2_PAD - H2)))
    b2 = jnp.pad(b2, ((0, 0), (0, H2_PAD - H2)))
    w3 = jnp.pad(w3, ((0, H2_PAD - H2), (0, OUT_PAD - action_dim)))
    b3 = jnp.pad(b3, ((0, 0), (0, OUT_PAD - action_dim)))
    return tuple(p.astype(dtype) for p in (w1, b1, w2, b2, w3, b3))


def dqn_reference(x, params, action_dim):
    w1, b1, w2, b2, w3, b3 = (p.astype(jnp.float32) for p in params)
    h1 = jnp.maximum(x @ w1 + b1, 0.0)
    h2 = jnp.maximum(h1 @ w2 + b2, 0.0)
    return (h2 @ w3 + b3)[:, :action_dim]


if __name__ == "__main__":
    STATE_DIM = 2    # MountainCar-v0 observation space
    ACTION_DIM = 3   # MountainCar-v0 action space
    BATCH = 8        # small deterministic test batch

    key = jax.random.PRNGKey(0)
    key, kx = jax.random.split(key)
    x = jax.random.normal(kx, (BATCH, STATE_DIM), jnp.float32)
    params = init_params(key, STATE_DIM, ACTION_DIM, dtype=jnp.bfloat16)

    out = jax.block_until_ready(dqn_forward(x, params, ACTION_DIM))
    ref = dqn_reference(x, params, ACTION_DIM)

    assert out.shape == (BATCH, ACTION_DIM)
    # bf16 weights / bf16 elementwise (on v6e/v7x) -> loose tolerance vs f32 reference.
    assert jnp.allclose(out, ref, atol=5e-2, rtol=5e-2), (out, ref)

    print("KERNEL_OK")
</pallas_src>

<mosaic_0001>
module attributes {stable_mosaic.version = 11 : i64} {
  func.func @dqn_kernel(%arg0: i32, %arg1: memref<8x2xf32, #tpu.memory_space<vmem>>, %arg2: memref<2x128xbf16, #tpu.memory_space<vmem>>, %arg3: memref<1x128xbf16, #tpu.memory_space<vmem>>, %arg4: memref<128x128xbf16, #tpu.memory_space<vmem>>, %arg5: memref<1x128xbf16, #tpu.memory_space<vmem>>, %arg6: memref<128x8xbf16, #tpu.memory_space<vmem>>, %arg7: memref<1x8xbf16, #tpu.memory_space<vmem>>, %arg8: memref<8x8xf32, #tpu.memory_space<vmem>>) attributes {dimension_semantics = [#tpu.dimension_semantics<parallel>], iteration_bounds = array<i64: 1>, scalar_prefetch = 0 : i64, scratch_operands = 0 : i64, tpu.core_type = #tpu.core_type<tc>, window_params = [{transform_indices = @transform_0, window_bounds = array<i64: 8, 2>}, {pipeline_mode = #tpu.pipeline_mode<synchronous>, transform_indices = @transform_1, window_bounds = array<i64: 2, 128>}, {pipeline_mode = #tpu.pipeline_mode<synchronous>, transform_indices = @transform_2, window_bounds = array<i64: 1, 128>}, {pipeline_mode = #tpu.pipeline_mode<synchronous>, transform_indices = @transform_3, window_bounds = array<i64: 128, 128>}, {pipeline_mode = #tpu.pipeline_mode<synchronous>, transform_indices = @transform_4, window_bounds = array<i64: 1, 128>}, {pipeline_mode = #tpu.pipeline_mode<synchronous>, transform_indices = @transform_5, window_bounds = array<i64: 128, 8>}, {pipeline_mode = #tpu.pipeline_mode<synchronous>, transform_indices = @transform_6, window_bounds = array<i64: 1, 8>}, {transform_indices = @transform_7, window_bounds = array<i64: 8, 8>}]} {
    %c0 = arith.constant 0 : index
    %c0_0 = arith.constant 0 : index
    %0 = vector.load %arg1[%c0, %c0_0] : memref<8x2xf32, #tpu.memory_space<vmem>>, vector<8x2xf32>
    %c0_1 = arith.constant 0 : index
    %c0_2 = arith.constant 0 : index
    %1 = vector.load %arg2[%c0_1, %c0_2] : memref<2x128xbf16, #tpu.memory_space<vmem>>, vector<2x128xbf16>
    %2 = arith.extf %1 : vector<2x128xbf16> to vector<2x128xf32>
    %c0_3 = arith.constant 0 : index
    %c0_4 = arith.constant 0 : index
    %3 = vector.load %arg3[%c0_3, %c0_4] : memref<1x128xbf16, #tpu.memory_space<vmem>>, vector<1x128xbf16>
    %4 = arith.extf %3 : vector<1x128xbf16> to vector<1x128xf32>
    %5 = vector.extract_strided_slice %0 {offsets = [0, 0], sizes = [8, 1], strides = [1, 1]} : vector<8x2xf32> to vector<8x1xf32>
    %6 = vector.extract_strided_slice %2 {offsets = [0, 0], sizes = [1, 128], strides = [1, 1]} : vector<2x128xf32> to vector<1x128xf32>
    %7 = vector.broadcast %5 : vector<8x1xf32> to vector<8x128xf32>
    %8 = vector.broadcast %6 : vector<1x128xf32> to vector<8x128xf32>
    %9 = arith.mulf %7, %8 : vector<8x128xf32>
    %10 = vector.broadcast %4 : vector<1x128xf32> to vector<8x128xf32>
    %11 = arith.addf %10, %9 : vector<8x128xf32>
    %12 = vector.extract_strided_slice %0 {offsets = [0, 1], sizes = [8, 1], strides = [1, 1]} : vector<8x2xf32> to vector<8x1xf32>
    %13 = vector.extract_strided_slice %2 {offsets = [1, 0], sizes = [1, 128], strides = [1, 1]} : vector<2x128xf32> to vector<1x128xf32>
    %14 = vector.broadcast %12 : vector<8x1xf32> to vector<8x128xf32>
    %15 = vector.broadcast %13 : vector<1x128xf32> to vector<8x128xf32>
    %16 = arith.mulf %14, %15 : vector<8x128xf32>
    %17 = arith.addf %11, %16 : vector<8x128xf32>
    %cst = arith.constant 0.000000e+00 : f32
    %18 = vector.broadcast %cst : f32 to vector<8x128xf32>
    %19 = arith.maximumf %17, %18 : vector<8x128xf32>
    %20 = arith.truncf %19 : vector<8x128xf32> to vector<8x128xbf16>
    %c0_5 = arith.constant 0 : index
    %c0_6 = arith.constant 0 : index
    %21 = vector.load %arg4[%c0_5, %c0_6] : memref<128x128xbf16, #tpu.memory_space<vmem>>, vector<128x128xbf16>
    %cst_7 = arith.constant dense<0.000000e+00> : vector<8x128xf32>
    %22 = tpu.matmul %20, %21, %cst_7 {dimension_numbers = #tpu.dot_dimension_numbers<[1], [0], [0], [1], [0, 0, 1, 1], [], []>} : vector<8x128xbf16>, vector<128x128xbf16>, vector<8x128xf32> -> vector<8x128xf32>
    %c0_8 = arith.constant 0 : index
    %c0_9 = arith.constant 0 : index
    %23 = vector.load %arg5[%c0_8, %c0_9] : memref<1x128xbf16, #tpu.memory_space<vmem>>, vector<1x128xbf16>
    %24 = arith.extf %23 : vector<1x128xbf16> to vector<1x128xf32>
    %25 = vector.broadcast %24 : vector<1x128xf32> to vector<8x128xf32>
    %26 = arith.addf %22, %25 : vector<8x128xf32>
    %cst_10 = arith.constant 0.000000e+00 : f32
    %27 = vector.broadcast %cst_10 : f32 to vector<8x128xf32>
    %28 = arith.maximumf %26, %27 : vector<8x128xf32>
    %29 = arith.truncf %28 : vector<8x128xf32> to vector<8x128xbf16>
    %c0_11 = arith.constant 0 : index
    %c0_12 = arith.constant 0 : index
    %30 = vector.load %arg6[%c0_11, %c0_12] : memref<128x8xbf16, #tpu.memory_space<vmem>>, vector<128x8xbf16>
    %cst_13 = arith.constant dense<0.000000e+00> : vector<8x8xf32>
    %31 = tpu.matmul %29, %30, %cst_13 {dimension_numbers = #tpu.dot_dimension_numbers<[1], [0], [0], [1], [0, 0, 1, 1], [], []>} : vector<8x128xbf16>, vector<128x8xbf16>, vector<8x8xf32> -> vector<8x8xf32>
    %c0_14 = arith.constant 0 : index
    %c0_15 = arith.constant 0 : index
    %32 = vector.load %arg7[%c0_14, %c0_15] : memref<1x8xbf16, #tpu.memory_space<vmem>>, vector<1x8xbf16>
    %33 = arith.extf %32 : vector<1x8xbf16> to vector<1x8xf32>
    %34 = vector.broadcast %33 : vector<1x8xf32> to vector<8x8xf32>
    %35 = arith.addf %31, %34 : vector<8x8xf32>
    %c0_16 = arith.constant 0 : index
    %c0_17 = arith.constant 0 : index
    %36 = vector.load %arg8[%c0_16, %c0_17] : memref<8x8xf32, #tpu.memory_space<vmem>>, vector<8x8xf32>
    tpu.vector_store %arg8[%c0_16, %c0_17], %35 {strides = array<i32>} : memref<8x8xf32, #tpu.memory_space<vmem>>, vector<8x8xf32>,
    return
  }
  func.func @transform_0(%arg0: i32) -> (i32, i32) {
    %c0_i32 = arith.constant 0 : i32
    %c0_i32_0 = arith.constant 0 : i32
    return %arg0, %c0_i32 : i32, i32
  }
  func.func @transform_1(%arg0: i32) -> (i32, i32) {
    %c0_i32 = arith.constant 0 : i32
    %c0_i32_0 = arith.constant 0 : i32
    %c0_i32_1 = arith.constant 0 : i32
    return %c0_i32, %c0_i32_0 : i32, i32
  }
  func.func @transform_2(%arg0: i32) -> (i32, i32) {
    %c0_i32 = arith.constant 0 : i32
    %c0_i32_0 = arith.constant 0 : i32
    %c0_i32_1 = arith.constant 0 : i32
    return %c0_i32, %c0_i32_0 : i32, i32
  }
  func.func @transform_3(%arg0: i32) -> (i32, i32) {
    %c0_i32 = arith.constant 0 : i32
    %c0_i32_0 = arith.constant 0 : i32
    %c0_i32_1 = arith.constant 0 : i32
    return %c0_i32, %c0_i32_0 : i32, i32
  }
  func.func @transform_4(%arg0: i32) -> (i32, i32) {
    %c0_i32 = arith.constant 0 : i32
    %c0_i32_0 = arith.constant 0 : i32
    %c0_i32_1 = arith.constant 0 : i32
    return %c0_i32, %c0_i32_0 : i32, i32
  }
  func.func @transform_5(%arg0: i32) -> (i32, i32) {
    %c0_i32 = arith.constant 0 : i32
    %c0_i32_0 = arith.constant 0 : i32
    %c0_i32_1 = arith.constant 0 : i32
    return %c0_i32, %c0_i32_0 : i32, i32
  }
  func.func @transform_6(%arg0: i32) -> (i32, i32) {
    %c0_i32 = arith.constant 0 : i32
    %c0_i32_0 = arith.constant 0 : i32
    %c0_i32_1 = arith.constant 0 : i32
    return %c0_i32, %c0_i32_0 : i32, i32
  }
  func.func @transform_7(%arg0: i32) -> (i32, i32) {
    %c0_i32 = arith.constant 0 : i32
    %c0_i32_0 = arith.constant 0 : i32
    return %arg0, %c0_i32 : i32, i32
  }
}

</mosaic_0001>

<bundles_post_ra>
// kernel: tpu_custom_call.1
= control target key start
LH: loop header
LB: loop body
LE: loop exit
PB: predicated region body
PF: predicated region fallthrough
CT: control target
= control target key end

     0   :  { %v417_v1 = vmov 0   ;;  %v418_v2 = vmov 0.0   ;;  %v419_v5 = vmov 1   ;;  %vm420_vm0 = vmmov 0   ;;  %s546_s0 = inlined_call_operand.vmem [shape: f32[8,2], index: 0, kind: input, shape index: {}]   ;;  %s547_s1 = inlined_call_operand.vmem [shape: bf16[2,128], index: 1, kind: input, shape index: {}]   ;;  %s548_s2 = inlined_call_operand.vmem [shape: bf16[1,128], index: 2, kind: input, shape index: {}]   ;;  %s549_s3 = inlined_call_operand.vmem [shape: bf16[128,128], index: 3, kind: input, shape index: {}]   ;;  %s550_s4 = inlined_call_operand.vmem [shape: bf16[1,128], index: 4, kind: input, shape index: {}]   ;;  %s551_s5 = inlined_call_operand.vmem [shape: bf16[128,8], index: 5, kind: input, shape index: {}]   ;;  %s552_s6 = inlined_call_operand.vmem [shape: bf16[1,8], index: 6, kind: input, shape index: {}]   ;;  %s553_s7 = inlined_call_operand.hbm [shape: f32[8,8], index: 7, kind: output, shape index: {}]  }
   0x1   :  { %v28_v0 = vld [vmem:[%s546_s0] sm:$0xff]  ;;  %377 = vset.pattern.permute.xlu0 %v417_v1  ;;  %332 = vmatprep.subr.bf16.mxu0 %v418_v2  ;;  %v379_v3 = vld [vmem:[%s549_s3 + $0x38] sm:$0xff]   ;;  %v380_v4 = vld [vmem:[%s549_s3 + $0x30] sm:$0xff]  }
   0x2   :  { %35 = vperm.xlu0 %377, %v28_v0   ;;  %352 = vmatprep.subr.bf16.mxu1 %v418_v2  ;;  %v381_v6 = vld [vmem:[%s549_s3 + $0x28] sm:$0xff]   ;;  %v382_v7 = vld [vmem:[%s549_s3 + $0x20] sm:$0xff]   ;;  %v387_v8 = vld [vmem:[%s551_s5 + $0x38] sm:$0xff]  }
   0x3   :  { %333 = vmatpush3.bf16.msra.mxu0 %v379_v3  ;;  %348 = vmatprep.mubr.msk.bf16.mxu0 %vm420_vm0, %v418_v2  ;;  %v388_v9 = vld [vmem:[%s551_s5 + $0x30] sm:$0xff]   ;;  %v383_v10 = vld [vmem:[%s549_s3 + $0x18] sm:$0xff]   ;;  %v389_v11 = vld [vmem:[%s551_s5 + $0x28] sm:$0xff]  }
   0x4   :  { %334 = vmatprep.subr.bf16.mxu0 %v418_v2  ;;  %368 = vmatprep.mubr.msk.bf16.mxu1 %vm420_vm0, %v418_v2 }
   0x5   :  { %353 = vmatpush3.bf16.msra.mxu1 %v387_v8 }
   0x6   :  { %378 = vset.pattern.permute.xlu0 %v419_v5  ;;  %354 = vmatprep.subr.bf16.mxu1 %v418_v2 }
   0x7   :  { %49 = vperm.xlu0 %378, %v28_v0   ;;  %335 = vmatpush3.bf16.msra.mxu0 %v380_v4 }
   0x8   :  { %336 = vmatprep.subr.bf16.mxu0 %v418_v2 }
   0x9   :  { %355 = vmatpush3.bf16.msra.mxu1 %v388_v9 }
   0xb   :  { %337 = vmatpush3.bf16.msra.mxu0 %v381_v6 }
   0xc   :  { %338 = vmatprep.subr.bf16.mxu0 %v418_v2 }
   0xf   :  { %339 = vmatpush3.bf16.msra.mxu0 %v382_v7 }
  0x10   :  { %340 = vmatprep.subr.bf16.mxu0 %v418_v2 }
  0x11   :  { %12 = vsyncpa [#allocation3], 0  ;;  %356 = vmatprep.subr.bf16.mxu1 %v418_v2  ;;  %v384_v12 = vld [vmem:[%s549_s3 + $0x10] sm:$0xff]   ;;  %v390_v13 = vld [vmem:[%s551_s5 + $0x20] sm:$0xff]   ;;  %v38_v18 = vlaneseq  ;;  %vm282_vm1 = vcmask 64512  }
  0x12   :  { %357 = vmatpush3.bf16.msra.mxu1 %v389_v11  ;;  %v385_v14 = vld [vmem:[%s549_s3 + $0x8] sm:$0xff]   ;;  %v391_v15 = vld [vmem:[%s551_s5 + $0x18] sm:$0xff]   ;;  %v386_v16 = vld [vmem:[%s549_s3] sm:$0xff]  }
  0x13   :  { %341 = vmatpush3.bf16.msra.mxu0 %v383_v10  ;;  %358 = vmatprep.subr.bf16.mxu1 %v418_v2  ;;  %v392_v17 = vld [vmem:[%s551_s5 + $0x10] sm:$0xff]   ;;  %v39_v19 = vshrl.u32 %v38_v18, 7  ;;  %v29_v20 = vld [vmem:[%s547_s1] sm:$0x1]  ;;  %v393_v37 = vld [vmem:[%s551_s5 + $0x8] sm:$0xff]  }
  0x14   :  { %342 = vmatprep.subr.bf16.mxu0 %v418_v2  ;;  %v30_v21 = vunpack.c.l.bf16 %v29_v20  ;;  %v31_v23 = vld [vmem:[%s548_s2] sm:$0x1] }
  0x15   :  { %v40_v22 = vsub.s32 0, %v39_v19  ;;  %v32_v24 = vunpack.c.l.bf16 %v31_v23  ;;  %v54_v26 = vsub.s32 1, %v39_v19  ;;  %v394_v38 = vld [vmem:[%s551_s5] sm:$0xff]   ;;  %s421_s5 = smov [#allocation2]  }
  0x16   :  { %359 = vmatpush3.bf16.msra.mxu1 %v390_v13  ;;  %v76_v39 = vld [vmem:[%s550_s4] sm:$0x1]  ;;  %s290_s15 = sshll.u32 %s421_s5, 4  ;;  %s291_s15 = int_to_ptr.vmem [resolvable:$true] %s290_s15 }
  0x17   :  { %343 = vmatpush3.bf16.msra.mxu0 %v384_v12  ;;  %360 = vmatprep.subr.bf16.mxu1 %v418_v2  ;;  %v41_v25 = vrot.slane %v30_v21, %v40_v22  ;;  %v46_v28 = vrot.slane %v32_v24, %v40_v22  ;;  %v55_v30 = vrot.slane %v30_v21, %v54_v26  ;;  %v77_v40 = vunpack.c.l.bf16 %v76_v39  ;;  %v188_v49 = vld [vmem:[%s552_s6] sm:$0x1]  ;;  %s395_s4 = scalar_lea.vmem %s291_s15, 128  ;;  %p400_p1 = scmp.lt.s32.totalorder %s291_s15, %s291_s15 }
  0x18   :  { %344 = vmatprep.subr.bf16.mxu0 %v418_v2  ;;  %v189_v50 = vunpack.c.l.bf16 %v188_v49  ;;  %p396_p0 = scmp.ne.s32.totalorder %s291_s15, %s395_s4  ;;  %p401_p2 = scmp.lt.s32.totalorder %s395_s4, %s395_s4 }
  0x19   :  { %v81_v41 = vrot.slane %v77_v40, %v40_v22 }
  0x1a   :  { %361 = vmatpush3.bf16.msra.mxu1 %v391_v15  ;;  %v193_v51 = vrot.slane %v189_v50, %v40_v22  ;;  %p402_p3 = por %p401_p2, %p400_p1 }
  0x1b   :  { %345 = vmatpush3.bf16.msra.mxu0 %v385_v14  ;;  %362 = vmatprep.subr.bf16.mxu1 %v418_v2 }
  0x1c   :  { %346 = vmatprep.subr.bf16.mxu0 %v418_v2  ;;  %p403_p4 = pnand %p402_p3, %p396_p0 }
  0x1e   :  { %363 = vmatpush3.bf16.msra.mxu1 %v392_v17 }
  0x1f   :  { %347 = vmatpush3.bf16.msra.mxu0 %v386_v16  ;;  %364 = vmatprep.subr.bf16.mxu1 %v418_v2 }
  0x22   :  { %365 = vmatpush3.bf16.msra.mxu1 %v393_v37 }
  0x23   :  { %366 = vmatprep.subr.bf16.mxu1 %v418_v2 }
  0x26   :  { %367 = vmatpush3.bf16.msra.mxu1 %v394_v38 }
  0x7d   :  { %v36_v27 = vpop.permute.xlu0 %35 }
  0x7e   :  { %v42_v29 = vmul.f32 %v41_v25, %v36_v27 }
  0x80   :  { %v47_v32 = vadd.f32 %v46_v28, %v42_v29 }
  0x82   :  { %v50_v31 = vpop.permute.xlu0 %49 }
  0x83   :  { %v56_v33 = vmul.f32 %v55_v30, %v50_v31 }
  0x85   :  { %v57_v34 = vadd.f32 %v56_v33, %v47_v32 }
  0x87   :  { %v58_v35 = vmax.f32 %v57_v34, 0.0 }
  0x89   :  { %v59_v36 = vpack.c.bf16 %v58_v35, %v58_v35 }
  0x8b   :  { %349 = vmatmul.mubr.bf16.vlgmr.msra.gmra.mxu0 %v59_v36 }
 0x14b   :  { %v164_v42 = vpop.f32.mrf.mxu0 }
 0x14c   :  { %v165_v43 = vadd.f32 %v164_v42, %v81_v41 }
 0x14d   :  { %v350_v44 = vpop.f32.mrf.mxu0 }
 0x14e   :  { %v170_v45 = vmax.f32 %v165_v43, 0.0 }
 0x14f   :  { %v167_v46 = vpop.f32.mrf.mxu0 }
 0x150   :  { %v171_v47 = vpack.c.bf16 %v170_v45, %v170_v45 }
 0x151   :  { %v351_v48 = vpop.f32.mrf.mxu0 }
 0x152   :  { %369 = vmatmul.mubr.bf16.vlgmr.msra.gmra.mxu1 %v171_v47 }
 0x212   :  { %v276_v52 = vpop.f32.mrf.mxu1 }
 0x213   :  { %v277_v53 = vadd.f32 %v276_v52, %v193_v51 }
 0x214   :  { %v370_v54 = vpop.f32.mrf.mxu1 }
 0x215   :  { %283 = vst.msk [vmem:[#allocation2] sm:$0xff] %vm282_vm1, %v277_v53 }
 0x216   :  { %v279_v55 = vpop.f32.mrf.mxu1 }
 0x217   :  { %406 = shalt.err (!%p403_p4)
}
 0x218   :  { %293 = dma.vmem_to_hbm [thread:$0]  %s291_s15, 128, %s553_s7, [#allocation3]   ;;  %v371_v56 = vpop.f32.mrf.mxu1 }
 0x219   :  { %415 = dma.done.wait [#allocation3], 128  }
 0x21a   :  { %416 = vsyncadd [#allocation3], 4294967168 }
 0x21b   :  { %297 = vsyncpa [#allocation3], 1 }

</bundles_post_ra>
